<compile_context>
chip_gen: v7x
topology: tpu7x:2x2x1
jax: 0.10.0
libtpu: 0.0.40
codegen_flags: <defaults>
</compile_context>

<pallas_src>
import jax
import jax.numpy as jnp
import numpy as np
from jax.experimental import pallas as pl
from jax.experimental.pallas import tpu as pltpu

NUM_FEATURES = 8
NUM_TERMS = 9          # count, bce, pos, speed, lat, tan, sin, cos, unit-circle
LANE = 128
SUBLANE = 8
MAX_ROW_TILE = 256     # 128-lane rows per grid step: (8,256,128) f32 = 1 MiB/input
                       # -> ~4-5 MiB per step incl. double-buffering; fits the
                       # v5e 16 MiB scoped-VMEM default with headroom.


def _mfl_kernel(o_ref, t_ref, acc_ref):
    """o_ref/t_ref: (8, RT, 128); acc_ref: (1, NUM_TERMS, 8, 128) f32 accumulator."""

    @pl.when(pl.program_id(1) == 0)
    def _():
        acc_ref[...] = jnp.zeros_like(acc_ref)

    o = o_ref[...].astype(jnp.float32)   # upcast in-kernel (bf16 inputs stay bf16 in HBM)
    t = t_ref[...].astype(jnp.float32)
    rt = o.shape[1]

    mask = t[0] == 1.0                   # (RT, 128) relevant agents

    logits = o[0]
    # One exp(-|x|) shared by the stable BCE softplus and the sigmoid.
    e = jnp.exp(-jnp.abs(logits))
    softplus = jnp.log1p(e)
    bce = jnp.maximum(logits, 0.0) - logits * t[0] + softplus
    inv_1pe = 1.0 / (1.0 + e)
    probs = jnp.where(logits >= 0.0, inv_1pe, e * inv_1pe)

    dpx = o[1] - t[1]
    dpy = o[2] - t[2]
    pos_mean = 0.5 * (dpx * dpx + dpy * dpy)   # per-agent mean over the 2 position dims

    def smooth_l1(d):
        ad = jnp.abs(d)
        return jnp.where(ad < 1.0, 0.5 * d * d, ad - 0.5)

    dsp = o[3] - t[3]
    sl_lat = smooth_l1(o[4] - t[4])
    sl_tan = smooth_l1(o[5] - t[5])
    dsin = o[6] - t[6]
    dcos = o[7] - t[7]
    uc = o[6] * o[6] + o[7] * o[7] - 1.0       # unit-circle residual

    def accumulate(idx, term):
        m = jnp.where(mask, term, 0.0)                            # select: NaN-safe masking
        p = m.reshape(rt // SUBLANE, SUBLANE, LANE).sum(axis=0)   # VALU vreg-group adds
        acc_ref[0, idx] += p                                      # (8,128) lane-parallel acc

    accumulate(0, jnp.ones_like(logits))       # relevant-agent count
    accumulate(1, bce)                         # class loss sum
    accumulate(2, pos_mean * probs)            # prob-weighted position sum
    accumulate(3, dsp * dsp)                   # speed MSE sum
    accumulate(4, sl_lat)                      # lateral acc smooth-L1 sum
    accumulate(5, sl_tan)                      # tangential acc smooth-L1 sum
    accumulate(6, dsin * dsin)                 # sin MSE sum
    accumulate(7, dcos * dcos)                 # cos MSE sum
    accumulate(8, uc * uc)                     # unit-circle MSE sum


@jax.jit
def multi_feature_loss(outputs, targets,
                       class_weight=10.0, position_weight=1000.0,
                       speed_weight=1.0, acceleration_weight=1.0,
                       angle_weight=1.0):
    """outputs, targets: (batch, max_agents, 8).  Returns (total_loss, info_dict)."""
    B, A, F = outputs.shape
    assert F == NUM_FEATURES
    N = B * A

    rows = -(-N // LANE)                                         # 128-lane rows needed
    r_tile = min(MAX_ROW_TILE, ((rows + SUBLANE - 1) // SUBLANE) * SUBLANE)
    n_tiles = -(-rows // r_tile)
    n_par = 2 if n_tiles >= 2 else 1                             # megacore / v7x split
    tiles_per_par = -(-n_tiles // n_par)
    rows_padded = n_par * tiles_per_par * r_tile
    Np = rows_padded * LANE

    # TODO(synk): if the producer can emit feature-major (8, N) activations (or
    # bf16) directly, this transpose+pad pass over HBM disappears entirely.
    def prep(x):
        if x.dtype != jnp.bfloat16:
            x = x.astype(jnp.float32)
        x = jnp.transpose(x.reshape(N, F))                       # (F, N)
        x = jnp.pad(x, ((0, 0), (0, Np - N)))                    # padded labels are 0 -> masked
        return x.reshape(F, rows_padded, LANE)

    o = prep(outputs)
    t = prep(targets)

    in_spec = pl.BlockSpec((F, r_tile, LANE),
                           lambda c, s: (0, c * tiles_per_par + s, 0))
    out_spec = pl.BlockSpec((1, NUM_TERMS, SUBLANE, LANE),
                            lambda c, s: (c, 0, 0, 0))

    acc = pl.pallas_call(
        _mfl_kernel,
        out_shape=jax.ShapeDtypeStruct((n_par, NUM_TERMS, SUBLANE, LANE), jnp.float32),
        grid_spec=pltpu.PrefetchScalarGridSpec(
            num_scalar_prefetch=0,
            grid=(n_par, tiles_per_par),
            in_specs=[in_spec, in_spec],
            out_specs=out_spec),
        compiler_params=pltpu.CompilerParams(
            dimension_semantics=("parallel", "arbitrary")),
    )(o, t)

    sums = jnp.sum(acc, axis=(0, 2, 3))        # (NUM_TERMS,) final tiny reduce in XLA

    count = sums[0]
    denom = jnp.maximum(count, 1.0)
    safe = lambda s: jnp.where(count > 0, s / denom, 0.0)

    class_loss = safe(sums[1])
    weighted_position_loss = safe(sums[2])
    speed_loss = safe(sums[3])
    lat_acc_loss = safe(sums[4])
    tan_acc_loss = safe(sums[5])
    sin_angle_loss = safe(sums[6])
    cos_angle_loss = safe(sums[7])
    # TODO(synk): PyTorch evaluates unit_circle_loss unconditionally (NaN when no
    # relevant agents exist); the degenerate empty case returns 0.0 here instead.
    unit_circle_loss = safe(sums[8])

    total_loss = (class_weight * class_loss
                  + position_weight * weighted_position_loss
                  + speed_weight * speed_loss
                  + acceleration_weight * (lat_acc_loss + tan_acc_loss)
                  + angle_weight * (sin_angle_loss + cos_angle_loss)
                  + angle_weight / 10 * unit_circle_loss)

    info = {  # JAX scalars (no device sync); caller may .item() if desired
        'class_loss': class_loss * class_weight,
        'position_loss': weighted_position_loss * position_weight,
        'speed_loss': speed_loss * speed_weight,
        'lat_acc_loss': lat_acc_loss * acceleration_weight,
        'tan_acc_loss': tan_acc_loss * acceleration_weight,
        'sin_angle_loss': sin_angle_loss * angle_weight,
        'cos_angle_loss': cos_angle_loss * angle_weight,
    }
    return total_loss, info


def _numpy_reference(o, t):
    """Mirrors the PyTorch forward with boolean masking (for a correctness check)."""
    o = np.asarray(o, np.float32)
    t = np.asarray(t, np.float32)
    mask = t[:, :, 0] == 1
    lg = o[:, :, 0][mask]
    tl = t[:, :, 0][mask]
    if lg.size == 0:
        return 0.0
    bce = np.maximum(lg, 0) - lg * tl + np.log1p(np.exp(-np.abs(lg)))
    class_loss = bce.mean()
    probs = 1.0 / (1.0 + np.exp(-lg))
    pp, tp = o[:, :, 1:3][mask], t[:, :, 1:3][mask]
    wpos = (((pp - tp) ** 2).mean(axis=1) * probs).mean()
    speed = ((o[:, :, 3][mask] - t[:, :, 3][mask]) ** 2).mean()
    sl1 = lambda d: np.where(np.abs(d) < 1, 0.5 * d * d, np.abs(d) - 0.5)
    lat = sl1(o[:, :, 4][mask] - t[:, :, 4][mask]).mean()
    tan = sl1(o[:, :, 5][mask] - t[:, :, 5][mask]).mean()
    sin = ((o[:, :, 6][mask] - t[:, :, 6][mask]) ** 2).mean()
    cos = ((o[:, :, 7][mask] - t[:, :, 7][mask]) ** 2).mean()
    uc = ((o[:, :, 6][mask] ** 2 + o[:, :, 7][mask] ** 2 - 1.0) ** 2).mean()
    return (10.0 * class_loss + 1000.0 * wpos + 1.0 * speed
            + 1.0 * (lat + tan) + 1.0 * (sin + cos) + 0.1 * uc)


if __name__ == "__main__":
    key = jax.random.PRNGKey(0)
    k_out, k_tgt, k_lbl = jax.random.split(key, 3)

    B, A = 2, 16
    outputs = jax.random.normal(k_out, (B, A, NUM_FEATURES), dtype=jnp.float32)
    targets = jax.random.normal(k_tgt, (B, A, NUM_FEATURES), dtype=jnp.float32)
    # class column of targets is a hard 0/1 label (relevant agents have label 1)
    labels = (jax.random.uniform(k_lbl, (B, A)) < 0.6).astype(jnp.float32)
    targets = targets.at[:, :, 0].set(labels)

    total_loss, info = multi_feature_loss(outputs, targets)
    total_loss = jax.block_until_ready(total_loss)

    ref = _numpy_reference(outputs, targets)
    assert np.allclose(float(total_loss), ref, rtol=1e-4, atol=1e-4), (float(total_loss), ref)

    print("KERNEL_OK")
</pallas_src>

<mosaic_0001>
module attributes {stable_mosaic.version = 11 : i64} {
  func.func @_mfl_kernel(%arg0: i32, %arg1: i32, %arg2: memref<8x8x128xf32, #tpu.memory_space<vmem>>, %arg3: memref<8x8x128xf32, #tpu.memory_space<vmem>>, %arg4: memref<1x9x8x128xf32, #tpu.memory_space<vmem>>) attributes {dimension_semantics = [#tpu.dimension_semantics<parallel>, #tpu.dimension_semantics<arbitrary>], iteration_bounds = array<i64: 1, 1>, scalar_prefetch = 0 : i64, scratch_operands = 0 : i64, tpu.core_type = #tpu.core_type<tc>, window_params = [{transform_indices = @transform_0, window_bounds = array<i64: 8, 8, 128>}, {transform_indices = @transform_1, window_bounds = array<i64: 8, 8, 128>}, {transform_indices = @transform_2, window_bounds = array<i64: 1, 9, 8, 128>}]} {
    %c0_i32 = arith.constant 0 : i32
    %0 = arith.cmpi eq, %arg1, %c0_i32 : i32
    %1 = arith.extui %0 : i1 to i32
    %c0_i32_0 = arith.constant 0 : i32
    %2 = arith.cmpi ne, %1, %c0_i32_0 : i32
    scf.if %2 {
      %cst_102 = arith.constant 0.000000e+00 : f32
      %198 = vector.broadcast %cst_102 : f32 to vector<1x9x8x128xf32>
      %c0_103 = arith.constant 0 : index
      %c0_104 = arith.constant 0 : index
      %c0_105 = arith.constant 0 : index
      %c0_106 = arith.constant 0 : index
      %199 = vector.load %arg4[%c0_103, %c0_104, %c0_105, %c0_106] : memref<1x9x8x128xf32, #tpu.memory_space<vmem>>, vector<1x9x8x128xf32>
      tpu.vector_store %arg4[%c0_103, %c0_104, %c0_105, %c0_106], %198 {strides = array<i32>} : memref<1x9x8x128xf32, #tpu.memory_space<vmem>>, vector<1x9x8x128xf32>,
    } else {
    }
    %c0 = arith.constant 0 : index
    %c0_1 = arith.constant 0 : index
    %c0_2 = arith.constant 0 : index
    %3 = vector.load %arg2[%c0, %c0_1, %c0_2] : memref<8x8x128xf32, #tpu.memory_space<vmem>>, vector<8x8x128xf32>
    %c0_3 = arith.constant 0 : index
    %c0_4 = arith.constant 0 : index
    %c0_5 = arith.constant 0 : index
    %4 = vector.load %arg3[%c0_3, %c0_4, %c0_5] : memref<8x8x128xf32, #tpu.memory_space<vmem>>, vector<8x8x128xf32>
    %5 = vector.extract_strided_slice %4 {offsets = [0, 0, 0], sizes = [1, 8, 128], strides = [1, 1, 1]} : vector<8x8x128xf32> to vector<1x8x128xf32>
    %6 = vector.shape_cast %5 : vector<1x8x128xf32> to vector<8x128xf32>
    %cst = arith.constant 1.000000e+00 : f32
    %7 = vector.broadcast %cst : f32 to vector<8x128xf32>
    %8 = arith.cmpf oeq, %6, %7 : vector<8x128xf32>
    %9 = vector.extract_strided_slice %3 {offsets = [0, 0, 0], sizes = [1, 8, 128], strides = [1, 1, 1]} : vector<8x8x128xf32> to vector<1x8x128xf32>
    %10 = vector.shape_cast %9 : vector<1x8x128xf32> to vector<8x128xf32>
    %11 = math.absf %10 : vector<8x128xf32>
    %cst_6 = arith.constant 0.000000e+00 : f32
    %12 = vector.broadcast %cst_6 : f32 to vector<8x128xf32>
    %13 = arith.subf %12, %11 : vector<8x128xf32>
    %14 = math.exp %13 : vector<8x128xf32>
    %15 = math.log1p %14 : vector<8x128xf32>
    %cst_7 = arith.constant 0.000000e+00 : f32
    %16 = vector.broadcast %cst_7 : f32 to vector<8x128xf32>
    %17 = arith.maximumf %10, %16 : vector<8x128xf32>
    %18 = vector.extract_strided_slice %4 {offsets = [0, 0, 0], sizes = [1, 8, 128], strides = [1, 1, 1]} : vector<8x8x128xf32> to vector<1x8x128xf32>
    %19 = vector.shape_cast %18 : vector<1x8x128xf32> to vector<8x128xf32>
    %20 = arith.mulf %10, %19 : vector<8x128xf32>
    %21 = arith.subf %17, %20 : vector<8x128xf32>
    %22 = arith.addf %21, %15 : vector<8x128xf32>
    %cst_8 = arith.constant 1.000000e+00 : f32
    %23 = vector.broadcast %cst_8 : f32 to vector<8x128xf32>
    %24 = arith.addf %23, %14 : vector<8x128xf32>
    %cst_9 = arith.constant 1.000000e+00 : f32
    %25 = vector.broadcast %cst_9 : f32 to vector<8x128xf32>
    %26 = arith.divf %25, %24 : vector<8x128xf32>
    %cst_10 = arith.constant 0.000000e+00 : f32
    %27 = vector.broadcast %cst_10 : f32 to vector<8x128xf32>
    %28 = arith.cmpf oge, %10, %27 : vector<8x128xf32>
    %29 = arith.mulf %14, %26 : vector<8x128xf32>
    %30 = arith.select %28, %26, %29 : vector<8x128xi1>, vector<8x128xf32>
    %31 = vector.extract_strided_slice %3 {offsets = [1, 0, 0], sizes = [1, 8, 128], strides = [1, 1, 1]} : vector<8x8x128xf32> to vector<1x8x128xf32>
    %32 = vector.shape_cast %31 : vector<1x8x128xf32> to vector<8x128xf32>
    %33 = vector.extract_strided_slice %4 {offsets = [1, 0, 0], sizes = [1, 8, 128], strides = [1, 1, 1]} : vector<8x8x128xf32> to vector<1x8x128xf32>
    %34 = vector.shape_cast %33 : vector<1x8x128xf32> to vector<8x128xf32>
    %35 = arith.subf %32, %34 : vector<8x128xf32>
    %36 = vector.extract_strided_slice %3 {offsets = [2, 0, 0], sizes = [1, 8, 128], strides = [1, 1, 1]} : vector<8x8x128xf32> to vector<1x8x128xf32>
    %37 = vector.shape_cast %36 : vector<1x8x128xf32> to vector<8x128xf32>
    %38 = vector.extract_strided_slice %4 {offsets = [2, 0, 0], sizes = [1, 8, 128], strides = [1, 1, 1]} : vector<8x8x128xf32> to vector<1x8x128xf32>
    %39 = vector.shape_cast %38 : vector<1x8x128xf32> to vector<8x128xf32>
    %40 = arith.subf %37, %39 : vector<8x128xf32>
    %41 = arith.mulf %35, %35 : vector<8x128xf32>
    %42 = arith.mulf %40, %40 : vector<8x128xf32>
    %43 = arith.addf %41, %42 : vector<8x128xf32>
    %cst_11 = arith.constant 5.000000e-01 : f32
    %44 = vector.broadcast %cst_11 : f32 to vector<8x128xf32>
    %45 = arith.mulf %44, %43 : vector<8x128xf32>
    %46 = vector.extract_strided_slice %3 {offsets = [3, 0, 0], sizes = [1, 8, 128], strides = [1, 1, 1]} : vector<8x8x128xf32> to vector<1x8x128xf32>
    %47 = vector.shape_cast %46 : vector<1x8x128xf32> to vector<8x128xf32>
    %48 = vector.extract_strided_slice %4 {offsets = [3, 0, 0], sizes = [1, 8, 128], strides = [1, 1, 1]} : vector<8x8x128xf32> to vector<1x8x128xf32>
    %49 = vector.shape_cast %48 : vector<1x8x128xf32> to vector<8x128xf32>
    %50 = arith.subf %47, %49 : vector<8x128xf32>
    %51 = vector.extract_strided_slice %3 {offsets = [4, 0, 0], sizes = [1, 8, 128], strides = [1, 1, 1]} : vector<8x8x128xf32> to vector<1x8x128xf32>
    %52 = vector.shape_cast %51 : vector<1x8x128xf32> to vector<8x128xf32>
    %53 = vector.extract_strided_slice %4 {offsets = [4, 0, 0], sizes = [1, 8, 128], strides = [1, 1, 1]} : vector<8x8x128xf32> to vector<1x8x128xf32>
    %54 = vector.shape_cast %53 : vector<1x8x128xf32> to vector<8x128xf32>
    %55 = arith.subf %52, %54 : vector<8x128xf32>
    %56 = math.absf %55 : vector<8x128xf32>
    %cst_12 = arith.constant 1.000000e+00 : f32
    %57 = vector.broadcast %cst_12 : f32 to vector<8x128xf32>
    %58 = arith.cmpf olt, %56, %57 : vector<8x128xf32>
    %cst_13 = arith.constant 5.000000e-01 : f32
    %59 = vector.broadcast %cst_13 : f32 to vector<8x128xf32>
    %60 = arith.mulf %59, %55 : vector<8x128xf32>
    %61 = arith.mulf %60, %55 : vector<8x128xf32>
    %cst_14 = arith.constant 5.000000e-01 : f32
    %62 = vector.broadcast %cst_14 : f32 to vector<8x128xf32>
    %63 = arith.subf %56, %62 : vector<8x128xf32>
    %64 = arith.select %58, %61, %63 : vector<8x128xi1>, vector<8x128xf32>
    %65 = vector.extract_strided_slice %3 {offsets = [5, 0, 0], sizes = [1, 8, 128], strides = [1, 1, 1]} : vector<8x8x128xf32> to vector<1x8x128xf32>
    %66 = vector.shape_cast %65 : vector<1x8x128xf32> to vector<8x128xf32>
    %67 = vector.extract_strided_slice %4 {offsets = [5, 0, 0], sizes = [1, 8, 128], strides = [1, 1, 1]} : vector<8x8x128xf32> to vector<1x8x128xf32>
    %68 = vector.shape_cast %67 : vector<1x8x128xf32> to vector<8x128xf32>
    %69 = arith.subf %66, %68 : vector<8x128xf32>
    %70 = math.absf %69 : vector<8x128xf32>
    %cst_15 = arith.constant 1.000000e+00 : f32
    %71 = vector.broadcast %cst_15 : f32 to vector<8x128xf32>
    %72 = arith.cmpf olt, %70, %71 : vector<8x128xf32>
    %cst_16 = arith.constant 5.000000e-01 : f32
    %73 = vector.broadcast %cst_16 : f32 to vector<8x128xf32>
    %74 = arith.mulf %73, %69 : vector<8x128xf32>
    %75 = arith.mulf %74, %69 : vector<8x128xf32>
    %cst_17 = arith.constant 5.000000e-01 : f32
    %76 = vector.broadcast %cst_17 : f32 to vector<8x128xf32>
    %77 = arith.subf %70, %76 : vector<8x128xf32>
    %78 = arith.select %72, %75, %77 : vector<8x128xi1>, vector<8x128xf32>
    %79 = vector.extract_strided_slice %3 {offsets = [6, 0, 0], sizes = [1, 8, 128], strides = [1, 1, 1]} : vector<8x8x128xf32> to vector<1x8x128xf32>
    %80 = vector.shape_cast %79 : vector<1x8x128xf32> to vector<8x128xf32>
    %81 = vector.extract_strided_slice %4 {offsets = [6, 0, 0], sizes = [1, 8, 128], strides = [1, 1, 1]} : vector<8x8x128xf32> to vector<1x8x128xf32>
    %82 = vector.shape_cast %81 : vector<1x8x128xf32> to vector<8x128xf32>
    %83 = arith.subf %80, %82 : vector<8x128xf32>
    %84 = vector.extract_strided_slice %3 {offsets = [7, 0, 0], sizes = [1, 8, 128], strides = [1, 1, 1]} : vector<8x8x128xf32> to vector<1x8x128xf32>
    %85 = vector.shape_cast %84 : vector<1x8x128xf32> to vector<8x128xf32>
    %86 = vector.extract_strided_slice %4 {offsets = [7, 0, 0], sizes = [1, 8, 128], strides = [1, 1, 1]} : vector<8x8x128xf32> to vector<1x8x128xf32>
    %87 = vector.shape_cast %86 : vector<1x8x128xf32> to vector<8x128xf32>
    %88 = arith.subf %85, %87 : vector<8x128xf32>
    %89 = vector.extract_strided_slice %3 {offsets = [6, 0, 0], sizes = [1, 8, 128], strides = [1, 1, 1]} : vector<8x8x128xf32> to vector<1x8x128xf32>
    %90 = vector.shape_cast %89 : vector<1x8x128xf32> to vector<8x128xf32>
    %91 = vector.extract_strided_slice %3 {offsets = [6, 0, 0], sizes = [1, 8, 128], strides = [1, 1, 1]} : vector<8x8x128xf32> to vector<1x8x128xf32>
    %92 = vector.shape_cast %91 : vector<1x8x128xf32> to vector<8x128xf32>
    %93 = arith.mulf %90, %92 : vector<8x128xf32>
    %94 = vector.extract_strided_slice %3 {offsets = [7, 0, 0], sizes = [1, 8, 128], strides = [1, 1, 1]} : vector<8x8x128xf32> to vector<1x8x128xf32>
    %95 = vector.shape_cast %94 : vector<1x8x128xf32> to vector<8x128xf32>
    %96 = vector.extract_strided_slice %3 {offsets = [7, 0, 0], sizes = [1, 8, 128], strides = [1, 1, 1]} : vector<8x8x128xf32> to vector<1x8x128xf32>
    %97 = vector.shape_cast %96 : vector<1x8x128xf32> to vector<8x128xf32>
    %98 = arith.mulf %95, %97 : vector<8x128xf32>
    %99 = arith.addf %93, %98 : vector<8x128xf32>
    %cst_18 = arith.constant 1.000000e+00 : f32
    %100 = vector.broadcast %cst_18 : f32 to vector<8x128xf32>
    %101 = arith.subf %99, %100 : vector<8x128xf32>
    %cst_19 = arith.constant 1.000000e+00 : f32
    %102 = vector.broadcast %cst_19 : f32 to vector<8x128xf32>
    %cst_20 = arith.constant 0.000000e+00 : f32
    %103 = vector.broadcast %cst_20 : f32 to vector<8x128xf32>
    %104 = arith.select %8, %102, %103 : vector<8x128xi1>, vector<8x128xf32>
    %105 = vector.shape_cast %104 : vector<8x128xf32> to vector<1x8x128xf32>
    %cst_21 = arith.constant dense<0.000000e+00> : vector<8x128xf32>
    %106 = vector.multi_reduction <add>, %105, %cst_21 [0] : vector<1x8x128xf32> to vector<8x128xf32>
    %c0_22 = arith.constant 0 : index
    %c0_23 = arith.constant 0 : index
    %c0_24 = arith.constant 0 : index
    %c0_25 = arith.constant 0 : index
    %107 = vector.load %arg4[%c0_22, %c0_23, %c0_24, %c0_25] : memref<1x9x8x128xf32, #tpu.memory_space<vmem>>, vector<1x1x8x128xf32>
    %108 = vector.shape_cast %107 : vector<1x1x8x128xf32> to vector<8x128xf32>
    %109 = arith.addf %108, %106 : vector<8x128xf32>
    %c0_26 = arith.constant 0 : index
    %c0_27 = arith.constant 0 : index
    %c0_28 = arith.constant 0 : index
    %c0_29 = arith.constant 0 : index
    %110 = vector.load %arg4[%c0_26, %c0_27, %c0_28, %c0_29] : memref<1x9x8x128xf32, #tpu.memory_space<vmem>>, vector<1x1x8x128xf32>
    %111 = vector.shape_cast %110 : vector<1x1x8x128xf32> to vector<8x128xf32>
    %112 = vector.shape_cast %109 : vector<8x128xf32> to vector<1x1x8x128xf32>
    tpu.vector_store %arg4[%c0_26, %c0_27, %c0_28, %c0_29], %112 {strides = array<i32>} : memref<1x9x8x128xf32, #tpu.memory_space<vmem>>, vector<1x1x8x128xf32>,
    %cst_30 = arith.constant 0.000000e+00 : f32
    %113 = vector.broadcast %cst_30 : f32 to vector<8x128xf32>
    %114 = arith.select %8, %22, %113 : vector<8x128xi1>, vector<8x128xf32>
    %115 = vector.shape_cast %114 : vector<8x128xf32> to vector<1x8x128xf32>
    %cst_31 = arith.constant dense<0.000000e+00> : vector<8x128xf32>
    %116 = vector.multi_reduction <add>, %115, %cst_31 [0] : vector<1x8x128xf32> to vector<8x128xf32>
    %c0_32 = arith.constant 0 : index
    %c1 = arith.constant 1 : index
    %c0_33 = arith.constant 0 : index
    %c0_34 = arith.constant 0 : index
    %117 = vector.load %arg4[%c0_32, %c1, %c0_33, %c0_34] : memref<1x9x8x128xf32, #tpu.memory_space<vmem>>, vector<1x1x8x128xf32>
    %118 = vector.shape_cast %117 : vector<1x1x8x128xf32> to vector<8x128xf32>
    %119 = arith.addf %118, %116 : vector<8x128xf32>
    %c0_35 = arith.constant 0 : index
    %c1_36 = arith.constant 1 : index
    %c0_37 = arith.constant 0 : index
    %c0_38 = arith.constant 0 : index
    %120 = vector.load %arg4[%c0_35, %c1_36, %c0_37, %c0_38] : memref<1x9x8x128xf32, #tpu.memory_space<vmem>>, vector<1x1x8x128xf32>
    %121 = vector.shape_cast %120 : vector<1x1x8x128xf32> to vector<8x128xf32>
    %122 = vector.shape_cast %119 : vector<8x128xf32> to vector<1x1x8x128xf32>
    tpu.vector_store %arg4[%c0_35, %c1_36, %c0_37, %c0_38], %122 {strides = array<i32>} : memref<1x9x8x128xf32, #tpu.memory_space<vmem>>, vector<1x1x8x128xf32>,
    %123 = arith.mulf %45, %30 : vector<8x128xf32>
    %cst_39 = arith.constant 0.000000e+00 : f32
    %124 = vector.broadcast %cst_39 : f32 to vector<8x128xf32>
    %125 = arith.select %8, %123, %124 : vector<8x128xi1>, vector<8x128xf32>
    %126 = vector.shape_cast %125 : vector<8x128xf32> to vector<1x8x128xf32>
    %cst_40 = arith.constant dense<0.000000e+00> : vector<8x128xf32>
    %127 = vector.multi_reduction <add>, %126, %cst_40 [0] : vector<1x8x128xf32> to vector<8x128xf32>
    %c0_41 = arith.constant 0 : index
    %c2 = arith.constant 2 : index
    %c0_42 = arith.constant 0 : index
    %c0_43 = arith.constant 0 : index
    %128 = vector.load %arg4[%c0_41, %c2, %c0_42, %c0_43] : memref<1x9x8x128xf32, #tpu.memory_space<vmem>>, vector<1x1x8x128xf32>
    %129 = vector.shape_cast %128 : vector<1x1x8x128xf32> to vector<8x128xf32>
    %130 = arith.addf %129, %127 : vector<8x128xf32>
    %c0_44 = arith.constant 0 : index
    %c2_45 = arith.constant 2 : index
    %c0_46 = arith.constant 0 : index
    %c0_47 = arith.constant 0 : index
    %131 = vector.load %arg4[%c0_44, %c2_45, %c0_46, %c0_47] : memref<1x9x8x128xf32, #tpu.memory_space<vmem>>, vector<1x1x8x128xf32>
    %132 = vector.shape_cast %131 : vector<1x1x8x128xf32> to vector<8x128xf32>
    %133 = vector.shape_cast %130 : vector<8x128xf32> to vector<1x1x8x128xf32>
    tpu.vector_store %arg4[%c0_44, %c2_45, %c0_46, %c0_47], %133 {strides = array<i32>} : memref<1x9x8x128xf32, #tpu.memory_space<vmem>>, vector<1x1x8x128xf32>,
    %134 = arith.mulf %50, %50 : vector<8x128xf32>
    %cst_48 = arith.constant 0.000000e+00 : f32
    %135 = vector.broadcast %cst_48 : f32 to vector<8x128xf32>
    %136 = arith.select %8, %134, %135 : vector<8x128xi1>, vector<8x128xf32>
    %137 = vector.shape_cast %136 : vector<8x128xf32> to vector<1x8x128xf32>
    %cst_49 = arith.constant dense<0.000000e+00> : vector<8x128xf32>
    %138 = vector.multi_reduction <add>, %137, %cst_49 [0] : vector<1x8x128xf32> to vector<8x128xf32>
    %c0_50 = arith.constant 0 : index
    %c3 = arith.constant 3 : index
    %c0_51 = arith.constant 0 : index
    %c0_52 = arith.constant 0 : index
    %139 = vector.load %arg4[%c0_50, %c3, %c0_51, %c0_52] : memref<1x9x8x128xf32, #tpu.memory_space<vmem>>, vector<1x1x8x128xf32>
    %140 = vector.shape_cast %139 : vector<1x1x8x128xf32> to vector<8x128xf32>
    %141 = arith.addf %140, %138 : vector<8x128xf32>
    %c0_53 = arith.constant 0 : index
    %c3_54 = arith.constant 3 : index
    %c0_55 = arith.constant 0 : index
    %c0_56 = arith.constant 0 : index
    %142 = vector.load %arg4[%c0_53, %c3_54, %c0_55, %c0_56] : memref<1x9x8x128xf32, #tpu.memory_space<vmem>>, vector<1x1x8x128xf32>
    %143 = vector.shape_cast %142 : vector<1x1x8x128xf32> to vector<8x128xf32>
    %144 = vector.shape_cast %141 : vector<8x128xf32> to vector<1x1x8x128xf32>
    tpu.vector_store %arg4[%c0_53, %c3_54, %c0_55, %c0_56], %144 {strides = array<i32>} : memref<1x9x8x128xf32, #tpu.memory_space<vmem>>, vector<1x1x8x128xf32>,
    %cst_57 = arith.constant 0.000000e+00 : f32
    %145 = vector.broadcast %cst_57 : f32 to vector<8x128xf32>
    %146 = arith.select %8, %64, %145 : vector<8x128xi1>, vector<8x128xf32>
    %147 = vector.shape_cast %146 : vector<8x128xf32> to vector<1x8x128xf32>
    %cst_58 = arith.constant dense<0.000000e+00> : vector<8x128xf32>
    %148 = vector.multi_reduction <add>, %147, %cst_58 [0] : vector<1x8x128xf32> to vector<8x128xf32>
    %c0_59 = arith.constant 0 : index
    %c4 = arith.constant 4 : index
    %c0_60 = arith.constant 0 : index
    %c0_61 = arith.constant 0 : index
    %149 = vector.load %arg4[%c0_59, %c4, %c0_60, %c0_61] : memref<1x9x8x128xf32, #tpu.memory_space<vmem>>, vector<1x1x8x128xf32>
    %150 = vector.shape_cast %149 : vector<1x1x8x128xf32> to vector<8x128xf32>
    %151 = arith.addf %150, %148 : vector<8x128xf32>
    %c0_62 = arith.constant 0 : index
    %c4_63 = arith.constant 4 : index
    %c0_64 = arith.constant 0 : index
    %c0_65 = arith.constant 0 : index
    %152 = vector.load %arg4[%c0_62, %c4_63, %c0_64, %c0_65] : memref<1x9x8x128xf32, #tpu.memory_space<vmem>>, vector<1x1x8x128xf32>
    %153 = vector.shape_cast %152 : vector<1x1x8x128xf32> to vector<8x128xf32>
    %154 = vector.shape_cast %151 : vector<8x128xf32> to vector<1x1x8x128xf32>
    tpu.vector_store %arg4[%c0_62, %c4_63, %c0_64, %c0_65], %154 {strides = array<i32>} : memref<1x9x8x128xf32, #tpu.memory_space<vmem>>, vector<1x1x8x128xf32>,
    %cst_66 = arith.constant 0.000000e+00 : f32
    %155 = vector.broadcast %cst_66 : f32 to vector<8x128xf32>
    %156 = arith.select %8, %78, %155 : vector<8x128xi1>, vector<8x128xf32>
    %157 = vector.shape_cast %156 : vector<8x128xf32> to vector<1x8x128xf32>
    %cst_67 = arith.constant dense<0.000000e+00> : vector<8x128xf32>
    %158 = vector.multi_reduction <add>, %157, %cst_67 [0] : vector<1x8x128xf32> to vector<8x128xf32>
    %c0_68 = arith.constant 0 : index
    %c5 = arith.constant 5 : index
    %c0_69 = arith.constant 0 : index
    %c0_70 = arith.constant 0 : index
    %159 = vector.load %arg4[%c0_68, %c5, %c0_69, %c0_70] : memref<1x9x8x128xf32, #tpu.memory_space<vmem>>, vector<1x1x8x128xf32>
    %160 = vector.shape_cast %159 : vector<1x1x8x128xf32> to vector<8x128xf32>
    %161 = arith.addf %160, %158 : vector<8x128xf32>
    %c0_71 = arith.constant 0 : index
    %c5_72 = arith.constant 5 : index
    %c0_73 = arith.constant 0 : index
    %c0_74 = arith.constant 0 : index
    %162 = vector.load %arg4[%c0_71, %c5_72, %c0_73, %c0_74] : memref<1x9x8x128xf32, #tpu.memory_space<vmem>>, vector<1x1x8x128xf32>
    %163 = vector.shape_cast %162 : vector<1x1x8x128xf32> to vector<8x128xf32>
    %164 = vector.shape_cast %161 : vector<8x128xf32> to vector<1x1x8x128xf32>
    tpu.vector_store %arg4[%c0_71, %c5_72, %c0_73, %c0_74], %164 {strides = array<i32>} : memref<1x9x8x128xf32, #tpu.memory_space<vmem>>, vector<1x1x8x128xf32>,
    %165 = arith.mulf %83, %83 : vector<8x128xf32>
    %cst_75 = arith.constant 0.000000e+00 : f32
    %166 = vector.broadcast %cst_75 : f32 to vector<8x128xf32>
    %167 = arith.select %8, %165, %166 : vector<8x128xi1>, vector<8x128xf32>
    %168 = vector.shape_cast %167 : vector<8x128xf32> to vector<1x8x128xf32>
    %cst_76 = arith.constant dense<0.000000e+00> : vector<8x128xf32>
    %169 = vector.multi_reduction <add>, %168, %cst_76 [0] : vector<1x8x128xf32> to vector<8x128xf32>
    %c0_77 = arith.constant 0 : index
    %c6 = arith.constant 6 : index
    %c0_78 = arith.constant 0 : index
    %c0_79 = arith.constant 0 : index
    %170 = vector.load %arg4[%c0_77, %c6, %c0_78, %c0_79] : memref<1x9x8x128xf32, #tpu.memory_space<vmem>>, vector<1x1x8x128xf32>
    %171 = vector.shape_cast %170 : vector<1x1x8x128xf32> to vector<8x128xf32>
    %172 = arith.addf %171, %169 : vector<8x128xf32>
    %c0_80 = arith.constant 0 : index
    %c6_81 = arith.constant 6 : index
    %c0_82 = arith.constant 0 : index
    %c0_83 = arith.constant 0 : index
    %173 = vector.load %arg4[%c0_80, %c6_81, %c0_82, %c0_83] : memref<1x9x8x128xf32, #tpu.memory_space<vmem>>, vector<1x1x8x128xf32>
    %174 = vector.shape_cast %173 : vector<1x1x8x128xf32> to vector<8x128xf32>
    %175 = vector.shape_cast %172 : vector<8x128xf32> to vector<1x1x8x128xf32>
    tpu.vector_store %arg4[%c0_80, %c6_81, %c0_82, %c0_83], %175 {strides = array<i32>} : memref<1x9x8x128xf32, #tpu.memory_space<vmem>>, vector<1x1x8x128xf32>,
    %176 = arith.mulf %88, %88 : vector<8x128xf32>
    %cst_84 = arith.constant 0.000000e+00 : f32
    %177 = vector.broadcast %cst_84 : f32 to vector<8x128xf32>
    %178 = arith.select %8, %176, %177 : vector<8x128xi1>, vector<8x128xf32>
    %179 = vector.shape_cast %178 : vector<8x128xf32> to vector<1x8x128xf32>
    %cst_85 = arith.constant dense<0.000000e+00> : vector<8x128xf32>
    %180 = vector.multi_reduction <add>, %179, %cst_85 [0] : vector<1x8x128xf32> to vector<8x128xf32>
    %c0_86 = arith.constant 0 : index
    %c7 = arith.constant 7 : index
    %c0_87 = arith.constant 0 : index
    %c0_88 = arith.constant 0 : index
    %181 = vector.load %arg4[%c0_86, %c7, %c0_87, %c0_88] : memref<1x9x8x128xf32, #tpu.memory_space<vmem>>, vector<1x1x8x128xf32>
    %182 = vector.shape_cast %181 : vector<1x1x8x128xf32> to vector<8x128xf32>
    %183 = arith.addf %182, %180 : vector<8x128xf32>
    %c0_89 = arith.constant 0 : index
    %c7_90 = arith.constant 7 : index
    %c0_91 = arith.constant 0 : index
    %c0_92 = arith.constant 0 : index
    %184 = vector.load %arg4[%c0_89, %c7_90, %c0_91, %c0_92] : memref<1x9x8x128xf32, #tpu.memory_space<vmem>>, vector<1x1x8x128xf32>
    %185 = vector.shape_cast %184 : vector<1x1x8x128xf32> to vector<8x128xf32>
    %186 = vector.shape_cast %183 : vector<8x128xf32> to vector<1x1x8x128xf32>
    tpu.vector_store %arg4[%c0_89, %c7_90, %c0_91, %c0_92], %186 {strides = array<i32>} : memref<1x9x8x128xf32, #tpu.memory_space<vmem>>, vector<1x1x8x128xf32>,
    %187 = arith.mulf %101, %101 : vector<8x128xf32>
    %cst_93 = arith.constant 0.000000e+00 : f32
    %188 = vector.broadcast %cst_93 : f32 to vector<8x128xf32>
    %189 = arith.select %8, %187, %188 : vector<8x128xi1>, vector<8x128xf32>
    %190 = vector.shape_cast %189 : vector<8x128xf32> to vector<1x8x128xf32>
    %cst_94 = arith.constant dense<0.000000e+00> : vector<8x128xf32>
    %191 = vector.multi_reduction <add>, %190, %cst_94 [0] : vector<1x8x128xf32> to vector<8x128xf32>
    %c0_95 = arith.constant 0 : index
    %c8 = arith.constant 8 : index
    %c0_96 = arith.constant 0 : index
    %c0_97 = arith.constant 0 : index
    %192 = vector.load %arg4[%c0_95, %c8, %c0_96, %c0_97] : memref<1x9x8x128xf32, #tpu.memory_space<vmem>>, vector<1x1x8x128xf32>
    %193 = vector.shape_cast %192 : vector<1x1x8x128xf32> to vector<8x128xf32>
    %194 = arith.addf %193, %191 : vector<8x128xf32>
    %c0_98 = arith.constant 0 : index
    %c8_99 = arith.constant 8 : index
    %c0_100 = arith.constant 0 : index
    %c0_101 = arith.constant 0 : index
    %195 = vector.load %arg4[%c0_98, %c8_99, %c0_100, %c0_101] : memref<1x9x8x128xf32, #tpu.memory_space<vmem>>, vector<1x1x8x128xf32>
    %196 = vector.shape_cast %195 : vector<1x1x8x128xf32> to vector<8x128xf32>
    %197 = vector.shape_cast %194 : vector<8x128xf32> to vector<1x1x8x128xf32>
    tpu.vector_store %arg4[%c0_98, %c8_99, %c0_100, %c0_101], %197 {strides = array<i32>} : memref<1x9x8x128xf32, #tpu.memory_space<vmem>>, vector<1x1x8x128xf32>,
    return
  }
  func.func @transform_0(%arg0: i32, %arg1: i32) -> (i32, i32, i32) {
    %c1_i32 = arith.constant 1 : i32
    %0 = arith.muli %arg0, %c1_i32 : i32
    %1 = arith.addi %0, %arg1 : i32
    %c0_i32 = arith.constant 0 : i32
    %c0_i32_0 = arith.constant 0 : i32
    %c0_i32_1 = arith.constant 0 : i32
    return %c0_i32, %1, %c0_i32_0 : i32, i32, i32
  }
  func.func @transform_1(%arg0: i32, %arg1: i32) -> (i32, i32, i32) {
    %c1_i32 = arith.constant 1 : i32
    %0 = arith.muli %arg0, %c1_i32 : i32
    %1 = arith.addi %0, %arg1 : i32
    %c0_i32 = arith.constant 0 : i32
    %c0_i32_0 = arith.constant 0 : i32
    %c0_i32_1 = arith.constant 0 : i32
    return %c0_i32, %1, %c0_i32_0 : i32, i32, i32
  }
  func.func @transform_2(%arg0: i32, %arg1: i32) -> (i32, i32, i32, i32) {
    %c0_i32 = arith.constant 0 : i32
    %c0_i32_0 = arith.constant 0 : i32
    %c0_i32_1 = arith.constant 0 : i32
    %c0_i32_2 = arith.constant 0 : i32
    return %arg0, %c0_i32, %c0_i32_0, %c0_i32_1 : i32, i32, i32, i32
  }
}

</mosaic_0001>

<bundles_post_ra>
// kernel: multi_feature_loss.1
= control target key start
LH: loop header
LB: loop body
LE: loop exit
PB: predicated region body
PF: predicated region fallthrough
CT: control target
= control target key end

     0   :  { %v225_v3 = vmov 0.0   ;;  %s344_s1 = inlined_call_operand.vmem [shape: f32[8,8,128], index: 1, kind: input, shape index: {}]   ;;  %s345_s0 = inlined_call_operand.vmem [shape: f32[8,8,128], index: 0, kind: input, shape index: {}]   ;;  %s346_s2 = inlined_call_operand.vmem [shape: f32[1,9,8,128], index: 2, kind: output, shape index: {}]  }
   0x1   :  { %v244_v0 = vld [vmem:[%s344_s1] sm:$0xff]  ;;  %v61_v5 = vld [vmem:[%s345_s0 + $0x18] sm:$0xff]  ;;  %v63_v10 = vld [vmem:[%s345_s0 + $0x28] sm:$0xff] }
   0x2   :  { %v249_v1 = vld [vmem:[%s345_s0] sm:$0xff]  ;;  %vm74_vm0 = vcmp.eq.f32.partialorder %v244_v0, 1.0  ;;  %v69_v6 = vld [vmem:[%s344_s1 + $0x18] sm:$0xff]  ;;  %v71_v13 = vld [vmem:[%s344_s1 + $0x28] sm:$0xff] }
   0x3   :  { %v75_v2 = vand.u32 2147483647, %v249_v1  ;;  %v125_v4 = vsel %vm74_vm0, 1.0, %v225_v3  ;;  %v62_v8 = vld [vmem:[%s345_s0 + $0x20] sm:$0xff]  ;;  %v104_v11 = vsub.f32 %v61_v5, %v69_v6  ;;  %v72_v14 = vld [vmem:[%s344_s1 + $0x30] sm:$0xff]  ;;  %v112_v16 = vsub.f32 %v63_v10, %v71_v13  ;;  %v73_v24 = vld [vmem:[%s344_s1 + $0x38] sm:$0xff] }
   0x4   :  { %v70_v9 = vld [vmem:[%s344_s1 + $0x20] sm:$0xff]  ;;  %129 = vst [vmem:[%s346_s2] sm:$0xff] %v125_v4  ;;  %v64_v17 = vld [vmem:[%s345_s0 + $0x30] sm:$0xff]  ;;  %v65_v28 = vld [vmem:[%s345_s0 + $0x38] sm:$0xff]  ;;  %v88_v59 = vmax.f32 %v249_v1, 0.0  ;;  %v89_v60 = vmul.f32 %v244_v0, %v249_v1  ;;  %vm95_vm4 = vcmp.ge.f32.partialorder %v249_v1, 0.0 }
   0x5   :  { %v76_v7 = vsub.f32 0.0, %v75_v2  ;;  %v105_v12 = vsub.f32 %v62_v8, %v70_v9  ;;  %v143_v18 = vmul.f32 %v104_v11, %v104_v11  ;;  %v119_v21 = vsub.f32 %v64_v17, %v72_v14  ;;  %v59_v43 = vld [vmem:[%s345_s0 + $0x8] sm:$0xff]  ;;  %v60_v45 = vld [vmem:[%s345_s0 + $0x10] sm:$0xff] }
   0x6   :  { %v113_v22 = vand.u32 2147483647, %v112_v16  ;;  %v115_v23 = vmul.f32 0.5, %v112_v16  ;;  %v121_v30 = vmul.f32 %v64_v17, %v64_v17  ;;  %v120_v34 = vsub.f32 %v65_v28, %v73_v24  ;;  %v67_v46 = vld [vmem:[%s344_s1 + $0x8] sm:$0xff]  ;;  %v68_v47 = vld [vmem:[%s344_s1 + $0x10] sm:$0xff] }
   0x7   :  { %v77_v15 = vmul.f32 1.442695, %v76_v7  ;;  %v106_v19 = vand.u32 2147483647, %v105_v12  ;;  %v108_v20 = vmul.f32 0.5, %v105_v12  ;;  %v144_v25 = vsel %vm74_vm0, %v143_v18, 0.0 }
   0x8   :  { %vm114_vm2 = vcmp.lt.f32.partialorder %v113_v22, 1.0  ;;  %v116_v29 = vmul.f32 %v115_v23, %v112_v16  ;;  %v200_v32 = vadd.f32 -0.5, %v113_v22  ;;  %v162_v33 = vmul.f32 %v119_v21, %v119_v21  ;;  %207 = vst [vmem:[%s346_s2 + $0x18] sm:$0xff] %v144_v25 }
   0x9   :  { %219 = vpow2.f32 %v77_v15  ;;  %vm107_vm1 = vcmp.lt.f32.partialorder %v106_v19, 1.0  ;;  %v109_v26 = vmul.f32 %v108_v20, %v105_v12  ;;  %v199_v27 = vadd.f32 -0.5, %v106_v19 }
   0xa   :  { %v122_v36 = vmul.f32 %v65_v28, %v65_v28  ;;  %v118_v37 = vsel %vm114_vm2, %v116_v29, %v200_v32  ;;  %v163_v38 = vsel %vm74_vm0, %v162_v33, 0.0  ;;  %v169_v39 = vmul.f32 %v120_v34, %v120_v34 }
   0xb   :  { %v111_v31 = vsel %vm107_vm1, %v109_v26, %v199_v27  ;;  %v156_v40 = vsel %vm74_vm0, %v118_v37, 0.0  ;;  %213 = vst [vmem:[%s346_s2 + $0x30] sm:$0xff] %v163_v38  ;;  %v98_v51 = vsub.f32 %v59_v43, %v67_v46  ;;  %v99_v52 = vsub.f32 %v60_v45, %v68_v47 }
   0xc   :  { %v150_v35 = vsel %vm74_vm0, %v111_v31, 0.0  ;;  %v123_v41 = vadd.f32 %v122_v36, %v121_v30  ;;  %v170_v42 = vsel %vm74_vm0, %v169_v39, 0.0  ;;  %211 = vst [vmem:[%s346_s2 + $0x28] sm:$0xff] %v156_v40  ;;  %v90_v2 = vsub.f32 %v88_v59, %v89_v60 }
   0xd   :  { %209 = vst [vmem:[%s346_s2 + $0x20] sm:$0xff] %v150_v35  ;;  %215 = vst [vmem:[%s346_s2 + $0x38] sm:$0xff] %v170_v42  ;;  %v100_v55 = vmul.f32 %v98_v51, %v98_v51  ;;  %v101_v56 = vmul.f32 %v99_v52, %v99_v52 }
   0xe   :  { %v201_v44 = vadd.f32 -1.0, %v123_v41 }
   0xf   :  { %v102_v61 = vadd.f32 %v101_v56, %v100_v55 }
  0x10   :  { %v176_v49 = vmul.f32 %v201_v44, %v201_v44 }
  0x11   :  { %v103_v5 = vmul.f32 0.5, %v102_v61 }
  0x12   :  { %v177_v53 = vsel %vm74_vm0, %v176_v49, 0.0 }
  0x13   :  { %v220_v48 = vpop.eup %219  ;;  %217 = vst [vmem:[%s346_s2 + $0x40] sm:$0xff] %v177_v53 }
  0x14   :  { %v79_v50 = vadd.f32 1.0, %v220_v48  ;;  %v82_v54 = vmul.f32 -0.5, %v220_v48  ;;  %v85_v58 = vand.u32 2147483647, %v220_v48 }
  0x16   :  { %221 = vlog2.f32 %v79_v50  ;;  %v83_v57 = vadd.f32 1.0, %v82_v54  ;;  %vm86_vm3 = vcmp.lt.f32.partialorder %v85_v58, 0.0004427343 }
  0x17   :  { %223 = vrcp.f32 %v79_v50 }
  0x18   :  { %v84_v62 = vmul.f32 %v220_v48, %v83_v57 }
  0x20   :  { %v222_v63 = vpop.eup %221 }
  0x21   :  { %v224_v3 = vpop.eup %223  ;;  %v81_v4 = vmul.f32 0.6931472, %v222_v63 }
  0x22   :  { %v96_v6 = vmul.f32 %v224_v3, %v220_v48 }
  0x23   :  { %v87_v7 = vsel %vm86_vm3, %v84_v62, %v81_v4 }
  0x24   :  { %v91_v8 = vadd.f32 %v90_v2, %v87_v7  ;;  %v97_v9 = vsel %vm95_vm4, %v224_v3, %v96_v6 }
  0x25   :  { %v136_v10 = vmul.f32 %v103_v5, %v97_v9 }
  0x26   :  { %v130_v11 = vsel %vm74_vm0, %v91_v8, 0.0 }
  0x27   :  { %v137_v12 = vsel %vm74_vm0, %v136_v10, 0.0  ;;  %203 = vst [vmem:[%s346_s2 + $0x8] sm:$0xff] %v130_v11 }
  0x28   :  { %205 = vst [vmem:[%s346_s2 + $0x10] sm:$0xff] %v137_v12 }

</bundles_post_ra>
